<compile_context>
chip_gen: v7x
topology: tpu7x:2x2x1
jax: 0.10.0
libtpu: 0.0.40
codegen_flags: <defaults>
</compile_context>

<pallas_src>
import functools

import jax
import jax.numpy as jnp
from jax.experimental import pallas as pl
from jax.experimental.pallas import tpu as pltpu

NUM_INPUTS = 2
NUM_CLASSES = 2


def mlp_softmax_kernel(w1_ref, b1_ref, w2_ref, b2_ref, x_ref, o_ref):
    """One batch tile.

    x_ref : (NUM_INPUTS, TILE_B)  VMEM   -- batch on the lane axis
    o_ref : (NUM_CLASSES, TILE_B) VMEM
    w1_ref: (H, NUM_INPUTS)       SMEM   (PyTorch [out, in] layout)
    b1_ref: (H,)                  SMEM
    w2_ref: (NUM_CLASSES, H)      SMEM
    b2_ref: (NUM_CLASSES,)        SMEM
    """
    H = w1_ref.shape[0]

    x0 = x_ref[0:1, :]          # (1, TILE_B)
    x1 = x_ref[1:2, :]          # (1, TILE_B)

    # Hidden layer + output layer fused: for each hidden unit j do a couple of
    # broadcast-FMAs on the VPU and accumulate its contribution to both logits.
    z0 = None
    z1 = None
    for j in range(H):                                   # statically unrolled
        hj = w1_ref[j, 0] * x0 + w1_ref[j, 1] * x1 + b1_ref[j]
        hj = jnp.maximum(hj, 0.0)                        # ReLU
        c0 = w2_ref[0, j] * hj
        c1 = w2_ref[1, j] * hj
        z0 = c0 if z0 is None else z0 + c0
        z1 = c1 if z1 is None else z1 + c1
    z0 = z0 + b2_ref[0]
    z1 = z1 + b2_ref[1]

    # 2-class softmax as explicit row ops (stabilized); reciprocal on the EUP.
    m = jnp.maximum(z0, z1)
    e0 = jnp.exp(z0 - m)
    e1 = jnp.exp(z1 - m)
    inv = pl.reciprocal(e0 + e1, approx=True)
    o_ref[0:1, :] = e0 * inv
    o_ref[1:2, :] = e1 * inv


@functools.partial(jax.jit, static_argnames=("tile_b",))
def net_forward(x, w1, b1, w2, b2, *, tile_b=2048):
    """Forward of Net: softmax(relu(x @ w1.T + b1) @ w2.T + b2, axis=1).

    x : [B, NUM_INPUTS]; w1: [H, NUM_INPUTS]; b1: [H];
    w2: [NUM_CLASSES, H]; b2: [NUM_CLASSES]   (PyTorch nn.Linear conventions).
    No per-call weight transposes are needed in this layout.
    """
    B = x.shape[0]
    H = w1.shape[0]

    bp = pl.cdiv(B, tile_b) * tile_b            # padded batch (multiple of 128)
    grid = (bp // tile_b,)

    # Batch onto the lane axis, zero-padded to a tile multiple.
    x_t = jnp.zeros((NUM_INPUTS, bp), jnp.float32).at[:, :B].set(
        x.astype(jnp.float32).T)

    smem = pltpu.MemorySpace.SMEM
    out_t = pl.pallas_call(
        mlp_softmax_kernel,
        out_shape=jax.ShapeDtypeStruct((NUM_CLASSES, bp), jnp.float32),
        grid=grid,
        in_specs=[
            # Tiny params: full-array blocks, constant index maps -> DMA'd to
            # SMEM once and kept resident across all grid steps.
            pl.BlockSpec((H, NUM_INPUTS), lambda i: (0, 0), memory_space=smem),
            pl.BlockSpec((H,), lambda i: (0,), memory_space=smem),
            pl.BlockSpec((NUM_CLASSES, H), lambda i: (0, 0), memory_space=smem),
            pl.BlockSpec((NUM_CLASSES,), lambda i: (0,), memory_space=smem),
            # Activations: lane-dense batch tiles, auto double-buffered.
            pl.BlockSpec((NUM_INPUTS, tile_b), lambda i: (0, i)),
        ],
        out_specs=pl.BlockSpec((NUM_CLASSES, tile_b), lambda i: (0, i)),
        compiler_params=pltpu.CompilerParams(
            dimension_semantics=("parallel",)),   # megacore split on v7x
    )(w1.astype(jnp.float32), b1.astype(jnp.float32),
      w2.astype(jnp.float32), b2.astype(jnp.float32), x_t)

    # Back to the PyTorch [batch, classes] layout, dropping padding.
    return out_t[:, :B].T


if __name__ == "__main__":
    # Shapes implied by the module: num_inputs=2, H=10, num_classes=2.
    B, H = 8, 10

    key = jax.random.PRNGKey(0)
    k_x, k_w1, k_b1, k_w2, k_b2 = jax.random.split(key, 5)

    # nn.Linear-style init: U(-1/sqrt(fan_in), 1/sqrt(fan_in)).
    bound1 = 1.0 / jnp.sqrt(jnp.float32(NUM_INPUTS))
    bound2 = 1.0 / jnp.sqrt(jnp.float32(H))
    w1 = jax.random.uniform(k_w1, (H, NUM_INPUTS), jnp.float32, -bound1, bound1)
    b1 = jax.random.uniform(k_b1, (H,), jnp.float32, -bound1, bound1)
    w2 = jax.random.uniform(k_w2, (NUM_CLASSES, H), jnp.float32, -bound2, bound2)
    b2 = jax.random.uniform(k_b2, (NUM_CLASSES,), jnp.float32, -bound2, bound2)

    x = jax.random.normal(k_x, (B, NUM_INPUTS), jnp.float32)

    out = net_forward(x, w1, b1, w2, b2)
    out = jax.block_until_ready(out)

    # Reference in plain JAX (same math as the PyTorch forward).
    h_ref = jnp.maximum(x @ w1.T + b1, 0.0)
    z_ref = h_ref @ w2.T + b2
    ref = jax.nn.softmax(z_ref, axis=1)

    assert out.shape == (B, NUM_CLASSES)
    # approx EUP reciprocal -> allow a slightly looser tolerance than exact div.
    assert jnp.allclose(out, ref, atol=2e-3), "mismatch vs reference"
    assert jnp.allclose(jnp.sum(out, axis=1), 1.0, atol=2e-3), "rows not normalized"

    print("KERNEL_OK")
</pallas_src>

<mosaic_0001>
module attributes {stable_mosaic.version = 11 : i64} {
  func.func @mlp_softmax_kernel(%arg0: i32, %arg1: memref<10x2xf32, #tpu.memory_space<smem>>, %arg2: memref<10xf32, #tpu.memory_space<smem>>, %arg3: memref<2x10xf32, #tpu.memory_space<smem>>, %arg4: memref<2xf32, #tpu.memory_space<smem>>, %arg5: memref<2x2048xf32, #tpu.memory_space<vmem>>, %arg6: memref<2x2048xf32, #tpu.memory_space<vmem>>) attributes {dimension_semantics = [#tpu.dimension_semantics<parallel>], iteration_bounds = array<i64: 1>, scalar_prefetch = 0 : i64, scratch_operands = 0 : i64, tpu.core_type = #tpu.core_type<tc>, window_params = [{transform_indices = @transform_0, window_bounds = array<i64: 10, 2>}, {transform_indices = @transform_1, window_bounds = array<i64: 10>}, {transform_indices = @transform_2, window_bounds = array<i64: 2, 10>}, {transform_indices = @transform_3, window_bounds = array<i64: 2>}, {transform_indices = @transform_4, window_bounds = array<i64: 2, 2048>}, {transform_indices = @transform_5, window_bounds = array<i64: 2, 2048>}]} {
    %c0 = arith.constant 0 : index
    %c0_0 = arith.constant 0 : index
    %0 = vector.load %arg5[%c0, %c0_0] : memref<2x2048xf32, #tpu.memory_space<vmem>>, vector<1x2048xf32>
    %c1 = arith.constant 1 : index
    %c0_1 = arith.constant 0 : index
    %1 = vector.load %arg5[%c1, %c0_1] : memref<2x2048xf32, #tpu.memory_space<vmem>>, vector<1x2048xf32>
    %c0_2 = arith.constant 0 : index
    %c0_3 = arith.constant 0 : index
    %2 = memref.load %arg1[%c0_2, %c0_3] : memref<10x2xf32, #tpu.memory_space<smem>>
    %3 = vector.broadcast %2 : f32 to vector<1x2048xf32>
    %4 = arith.mulf %3, %0 : vector<1x2048xf32>
    %c0_4 = arith.constant 0 : index
    %c1_5 = arith.constant 1 : index
    %5 = memref.load %arg1[%c0_4, %c1_5] : memref<10x2xf32, #tpu.memory_space<smem>>
    %6 = vector.broadcast %5 : f32 to vector<1x2048xf32>
    %7 = arith.mulf %6, %1 : vector<1x2048xf32>
    %8 = arith.addf %4, %7 : vector<1x2048xf32>
    %c0_6 = arith.constant 0 : index
    %9 = memref.load %arg2[%c0_6] : memref<10xf32, #tpu.memory_space<smem>>
    %10 = vector.broadcast %9 : f32 to vector<1x2048xf32>
    %11 = arith.addf %8, %10 : vector<1x2048xf32>
    %cst = arith.constant 0.000000e+00 : f32
    %12 = vector.broadcast %cst : f32 to vector<1x2048xf32>
    %13 = arith.maximumf %11, %12 : vector<1x2048xf32>
    %c0_7 = arith.constant 0 : index
    %c0_8 = arith.constant 0 : index
    %14 = memref.load %arg3[%c0_7, %c0_8] : memref<2x10xf32, #tpu.memory_space<smem>>
    %15 = vector.broadcast %14 : f32 to vector<1x2048xf32>
    %16 = arith.mulf %15, %13 : vector<1x2048xf32>
    %c1_9 = arith.constant 1 : index
    %c0_10 = arith.constant 0 : index
    %17 = memref.load %arg3[%c1_9, %c0_10] : memref<2x10xf32, #tpu.memory_space<smem>>
    %18 = vector.broadcast %17 : f32 to vector<1x2048xf32>
    %19 = arith.mulf %18, %13 : vector<1x2048xf32>
    %c1_11 = arith.constant 1 : index
    %c0_12 = arith.constant 0 : index
    %20 = memref.load %arg1[%c1_11, %c0_12] : memref<10x2xf32, #tpu.memory_space<smem>>
    %21 = vector.broadcast %20 : f32 to vector<1x2048xf32>
    %22 = arith.mulf %21, %0 : vector<1x2048xf32>
    %c1_13 = arith.constant 1 : index
    %c1_14 = arith.constant 1 : index
    %23 = memref.load %arg1[%c1_13, %c1_14] : memref<10x2xf32, #tpu.memory_space<smem>>
    %24 = vector.broadcast %23 : f32 to vector<1x2048xf32>
    %25 = arith.mulf %24, %1 : vector<1x2048xf32>
    %26 = arith.addf %22, %25 : vector<1x2048xf32>
    %c1_15 = arith.constant 1 : index
    %27 = memref.load %arg2[%c1_15] : memref<10xf32, #tpu.memory_space<smem>>
    %28 = vector.broadcast %27 : f32 to vector<1x2048xf32>
    %29 = arith.addf %26, %28 : vector<1x2048xf32>
    %cst_16 = arith.constant 0.000000e+00 : f32
    %30 = vector.broadcast %cst_16 : f32 to vector<1x2048xf32>
    %31 = arith.maximumf %29, %30 : vector<1x2048xf32>
    %c0_17 = arith.constant 0 : index
    %c1_18 = arith.constant 1 : index
    %32 = memref.load %arg3[%c0_17, %c1_18] : memref<2x10xf32, #tpu.memory_space<smem>>
    %33 = vector.broadcast %32 : f32 to vector<1x2048xf32>
    %34 = arith.mulf %33, %31 : vector<1x2048xf32>
    %c1_19 = arith.constant 1 : index
    %c1_20 = arith.constant 1 : index
    %35 = memref.load %arg3[%c1_19, %c1_20] : memref<2x10xf32, #tpu.memory_space<smem>>
    %36 = vector.broadcast %35 : f32 to vector<1x2048xf32>
    %37 = arith.mulf %36, %31 : vector<1x2048xf32>
    %38 = arith.addf %16, %34 : vector<1x2048xf32>
    %39 = arith.addf %19, %37 : vector<1x2048xf32>
    %c2 = arith.constant 2 : index
    %c0_21 = arith.constant 0 : index
    %40 = memref.load %arg1[%c2, %c0_21] : memref<10x2xf32, #tpu.memory_space<smem>>
    %41 = vector.broadcast %40 : f32 to vector<1x2048xf32>
    %42 = arith.mulf %41, %0 : vector<1x2048xf32>
    %c2_22 = arith.constant 2 : index
    %c1_23 = arith.constant 1 : index
    %43 = memref.load %arg1[%c2_22, %c1_23] : memref<10x2xf32, #tpu.memory_space<smem>>
    %44 = vector.broadcast %43 : f32 to vector<1x2048xf32>
    %45 = arith.mulf %44, %1 : vector<1x2048xf32>
    %46 = arith.addf %42, %45 : vector<1x2048xf32>
    %c2_24 = arith.constant 2 : index
    %47 = memref.load %arg2[%c2_24] : memref<10xf32, #tpu.memory_space<smem>>
    %48 = vector.broadcast %47 : f32 to vector<1x2048xf32>
    %49 = arith.addf %46, %48 : vector<1x2048xf32>
    %cst_25 = arith.constant 0.000000e+00 : f32
    %50 = vector.broadcast %cst_25 : f32 to vector<1x2048xf32>
    %51 = arith.maximumf %49, %50 : vector<1x2048xf32>
    %c0_26 = arith.constant 0 : index
    %c2_27 = arith.constant 2 : index
    %52 = memref.load %arg3[%c0_26, %c2_27] : memref<2x10xf32, #tpu.memory_space<smem>>
    %53 = vector.broadcast %52 : f32 to vector<1x2048xf32>
    %54 = arith.mulf %53, %51 : vector<1x2048xf32>
    %c1_28 = arith.constant 1 : index
    %c2_29 = arith.constant 2 : index
    %55 = memref.load %arg3[%c1_28, %c2_29] : memref<2x10xf32, #tpu.memory_space<smem>>
    %56 = vector.broadcast %55 : f32 to vector<1x2048xf32>
    %57 = arith.mulf %56, %51 : vector<1x2048xf32>
    %58 = arith.addf %38, %54 : vector<1x2048xf32>
    %59 = arith.addf %39, %57 : vector<1x2048xf32>
    %c3 = arith.constant 3 : index
    %c0_30 = arith.constant 0 : index
    %60 = memref.load %arg1[%c3, %c0_30] : memref<10x2xf32, #tpu.memory_space<smem>>
    %61 = vector.broadcast %60 : f32 to vector<1x2048xf32>
    %62 = arith.mulf %61, %0 : vector<1x2048xf32>
    %c3_31 = arith.constant 3 : index
    %c1_32 = arith.constant 1 : index
    %63 = memref.load %arg1[%c3_31, %c1_32] : memref<10x2xf32, #tpu.memory_space<smem>>
    %64 = vector.broadcast %63 : f32 to vector<1x2048xf32>
    %65 = arith.mulf %64, %1 : vector<1x2048xf32>
    %66 = arith.addf %62, %65 : vector<1x2048xf32>
    %c3_33 = arith.constant 3 : index
    %67 = memref.load %arg2[%c3_33] : memref<10xf32, #tpu.memory_space<smem>>
    %68 = vector.broadcast %67 : f32 to vector<1x2048xf32>
    %69 = arith.addf %66, %68 : vector<1x2048xf32>
    %cst_34 = arith.constant 0.000000e+00 : f32
    %70 = vector.broadcast %cst_34 : f32 to vector<1x2048xf32>
    %71 = arith.maximumf %69, %70 : vector<1x2048xf32>
    %c0_35 = arith.constant 0 : index
    %c3_36 = arith.constant 3 : index
    %72 = memref.load %arg3[%c0_35, %c3_36] : memref<2x10xf32, #tpu.memory_space<smem>>
    %73 = vector.broadcast %72 : f32 to vector<1x2048xf32>
    %74 = arith.mulf %73, %71 : vector<1x2048xf32>
    %c1_37 = arith.constant 1 : index
    %c3_38 = arith.constant 3 : index
    %75 = memref.load %arg3[%c1_37, %c3_38] : memref<2x10xf32, #tpu.memory_space<smem>>
    %76 = vector.broadcast %75 : f32 to vector<1x2048xf32>
    %77 = arith.mulf %76, %71 : vector<1x2048xf32>
    %78 = arith.addf %58, %74 : vector<1x2048xf32>
    %79 = arith.addf %59, %77 : vector<1x2048xf32>
    %c4 = arith.constant 4 : index
    %c0_39 = arith.constant 0 : index
    %80 = memref.load %arg1[%c4, %c0_39] : memref<10x2xf32, #tpu.memory_space<smem>>
    %81 = vector.broadcast %80 : f32 to vector<1x2048xf32>
    %82 = arith.mulf %81, %0 : vector<1x2048xf32>
    %c4_40 = arith.constant 4 : index
    %c1_41 = arith.constant 1 : index
    %83 = memref.load %arg1[%c4_40, %c1_41] : memref<10x2xf32, #tpu.memory_space<smem>>
    %84 = vector.broadcast %83 : f32 to vector<1x2048xf32>
    %85 = arith.mulf %84, %1 : vector<1x2048xf32>
    %86 = arith.addf %82, %85 : vector<1x2048xf32>
    %c4_42 = arith.constant 4 : index
    %87 = memref.load %arg2[%c4_42] : memref<10xf32, #tpu.memory_space<smem>>
    %88 = vector.broadcast %87 : f32 to vector<1x2048xf32>
    %89 = arith.addf %86, %88 : vector<1x2048xf32>
    %cst_43 = arith.constant 0.000000e+00 : f32
    %90 = vector.broadcast %cst_43 : f32 to vector<1x2048xf32>
    %91 = arith.maximumf %89, %90 : vector<1x2048xf32>
    %c0_44 = arith.constant 0 : index
    %c4_45 = arith.constant 4 : index
    %92 = memref.load %arg3[%c0_44, %c4_45] : memref<2x10xf32, #tpu.memory_space<smem>>
    %93 = vector.broadcast %92 : f32 to vector<1x2048xf32>
    %94 = arith.mulf %93, %91 : vector<1x2048xf32>
    %c1_46 = arith.constant 1 : index
    %c4_47 = arith.constant 4 : index
    %95 = memref.load %arg3[%c1_46, %c4_47] : memref<2x10xf32, #tpu.memory_space<smem>>
    %96 = vector.broadcast %95 : f32 to vector<1x2048xf32>
    %97 = arith.mulf %96, %91 : vector<1x2048xf32>
    %98 = arith.addf %78, %94 : vector<1x2048xf32>
    %99 = arith.addf %79, %97 : vector<1x2048xf32>
    %c5 = arith.constant 5 : index
    %c0_48 = arith.constant 0 : index
    %100 = memref.load %arg1[%c5, %c0_48] : memref<10x2xf32, #tpu.memory_space<smem>>
    %101 = vector.broadcast %100 : f32 to vector<1x2048xf32>
    %102 = arith.mulf %101, %0 : vector<1x2048xf32>
    %c5_49 = arith.constant 5 : index
    %c1_50 = arith.constant 1 : index
    %103 = memref.load %arg1[%c5_49, %c1_50] : memref<10x2xf32, #tpu.memory_space<smem>>
    %104 = vector.broadcast %103 : f32 to vector<1x2048xf32>
    %105 = arith.mulf %104, %1 : vector<1x2048xf32>
    %106 = arith.addf %102, %105 : vector<1x2048xf32>
    %c5_51 = arith.constant 5 : index
    %107 = memref.load %arg2[%c5_51] : memref<10xf32, #tpu.memory_space<smem>>
    %108 = vector.broadcast %107 : f32 to vector<1x2048xf32>
    %109 = arith.addf %106, %108 : vector<1x2048xf32>
    %cst_52 = arith.constant 0.000000e+00 : f32
    %110 = vector.broadcast %cst_52 : f32 to vector<1x2048xf32>
    %111 = arith.maximumf %109, %110 : vector<1x2048xf32>
    %c0_53 = arith.constant 0 : index
    %c5_54 = arith.constant 5 : index
    %112 = memref.load %arg3[%c0_53, %c5_54] : memref<2x10xf32, #tpu.memory_space<smem>>
    %113 = vector.broadcast %112 : f32 to vector<1x2048xf32>
    %114 = arith.mulf %113, %111 : vector<1x2048xf32>
    %c1_55 = arith.constant 1 : index
    %c5_56 = arith.constant 5 : index
    %115 = memref.load %arg3[%c1_55, %c5_56] : memref<2x10xf32, #tpu.memory_space<smem>>
    %116 = vector.broadcast %115 : f32 to vector<1x2048xf32>
    %117 = arith.mulf %116, %111 : vector<1x2048xf32>
    %118 = arith.addf %98, %114 : vector<1x2048xf32>
    %119 = arith.addf %99, %117 : vector<1x2048xf32>
    %c6 = arith.constant 6 : index
    %c0_57 = arith.constant 0 : index
    %120 = memref.load %arg1[%c6, %c0_57] : memref<10x2xf32, #tpu.memory_space<smem>>
    %121 = vector.broadcast %120 : f32 to vector<1x2048xf32>
    %122 = arith.mulf %121, %0 : vector<1x2048xf32>
    %c6_58 = arith.constant 6 : index
    %c1_59 = arith.constant 1 : index
    %123 = memref.load %arg1[%c6_58, %c1_59] : memref<10x2xf32, #tpu.memory_space<smem>>
    %124 = vector.broadcast %123 : f32 to vector<1x2048xf32>
    %125 = arith.mulf %124, %1 : vector<1x2048xf32>
    %126 = arith.addf %122, %125 : vector<1x2048xf32>
    %c6_60 = arith.constant 6 : index
    %127 = memref.load %arg2[%c6_60] : memref<10xf32, #tpu.memory_space<smem>>
    %128 = vector.broadcast %127 : f32 to vector<1x2048xf32>
    %129 = arith.addf %126, %128 : vector<1x2048xf32>
    %cst_61 = arith.constant 0.000000e+00 : f32
    %130 = vector.broadcast %cst_61 : f32 to vector<1x2048xf32>
    %131 = arith.maximumf %129, %130 : vector<1x2048xf32>
    %c0_62 = arith.constant 0 : index
    %c6_63 = arith.constant 6 : index
    %132 = memref.load %arg3[%c0_62, %c6_63] : memref<2x10xf32, #tpu.memory_space<smem>>
    %133 = vector.broadcast %132 : f32 to vector<1x2048xf32>
    %134 = arith.mulf %133, %131 : vector<1x2048xf32>
    %c1_64 = arith.constant 1 : index
    %c6_65 = arith.constant 6 : index
    %135 = memref.load %arg3[%c1_64, %c6_65] : memref<2x10xf32, #tpu.memory_space<smem>>
    %136 = vector.broadcast %135 : f32 to vector<1x2048xf32>
    %137 = arith.mulf %136, %131 : vector<1x2048xf32>
    %138 = arith.addf %118, %134 : vector<1x2048xf32>
    %139 = arith.addf %119, %137 : vector<1x2048xf32>
    %c7 = arith.constant 7 : index
    %c0_66 = arith.constant 0 : index
    %140 = memref.load %arg1[%c7, %c0_66] : memref<10x2xf32, #tpu.memory_space<smem>>
    %141 = vector.broadcast %140 : f32 to vector<1x2048xf32>
    %142 = arith.mulf %141, %0 : vector<1x2048xf32>
    %c7_67 = arith.constant 7 : index
    %c1_68 = arith.constant 1 : index
    %143 = memref.load %arg1[%c7_67, %c1_68] : memref<10x2xf32, #tpu.memory_space<smem>>
    %144 = vector.broadcast %143 : f32 to vector<1x2048xf32>
    %145 = arith.mulf %144, %1 : vector<1x2048xf32>
    %146 = arith.addf %142, %145 : vector<1x2048xf32>
    %c7_69 = arith.constant 7 : index
    %147 = memref.load %arg2[%c7_69] : memref<10xf32, #tpu.memory_space<smem>>
    %148 = vector.broadcast %147 : f32 to vector<1x2048xf32>
    %149 = arith.addf %146, %148 : vector<1x2048xf32>
    %cst_70 = arith.constant 0.000000e+00 : f32
    %150 = vector.broadcast %cst_70 : f32 to vector<1x2048xf32>
    %151 = arith.maximumf %149, %150 : vector<1x2048xf32>
    %c0_71 = arith.constant 0 : index
    %c7_72 = arith.constant 7 : index
    %152 = memref.load %arg3[%c0_71, %c7_72] : memref<2x10xf32, #tpu.memory_space<smem>>
    %153 = vector.broadcast %152 : f32 to vector<1x2048xf32>
    %154 = arith.mulf %153, %151 : vector<1x2048xf32>
    %c1_73 = arith.constant 1 : index
    %c7_74 = arith.constant 7 : index
    %155 = memref.load %arg3[%c1_73, %c7_74] : memref<2x10xf32, #tpu.memory_space<smem>>
    %156 = vector.broadcast %155 : f32 to vector<1x2048xf32>
    %157 = arith.mulf %156, %151 : vector<1x2048xf32>
    %158 = arith.addf %138, %154 : vector<1x2048xf32>
    %159 = arith.addf %139, %157 : vector<1x2048xf32>
    %c8 = arith.constant 8 : index
    %c0_75 = arith.constant 0 : index
    %160 = memref.load %arg1[%c8, %c0_75] : memref<10x2xf32, #tpu.memory_space<smem>>
    %161 = vector.broadcast %160 : f32 to vector<1x2048xf32>
    %162 = arith.mulf %161, %0 : vector<1x2048xf32>
    %c8_76 = arith.constant 8 : index
    %c1_77 = arith.constant 1 : index
    %163 = memref.load %arg1[%c8_76, %c1_77] : memref<10x2xf32, #tpu.memory_space<smem>>
    %164 = vector.broadcast %163 : f32 to vector<1x2048xf32>
    %165 = arith.mulf %164, %1 : vector<1x2048xf32>
    %166 = arith.addf %162, %165 : vector<1x2048xf32>
    %c8_78 = arith.constant 8 : index
    %167 = memref.load %arg2[%c8_78] : memref<10xf32, #tpu.memory_space<smem>>
    %168 = vector.broadcast %167 : f32 to vector<1x2048xf32>
    %169 = arith.addf %166, %168 : vector<1x2048xf32>
    %cst_79 = arith.constant 0.000000e+00 : f32
    %170 = vector.broadcast %cst_79 : f32 to vector<1x2048xf32>
    %171 = arith.maximumf %169, %170 : vector<1x2048xf32>
    %c0_80 = arith.constant 0 : index
    %c8_81 = arith.constant 8 : index
    %172 = memref.load %arg3[%c0_80, %c8_81] : memref<2x10xf32, #tpu.memory_space<smem>>
    %173 = vector.broadcast %172 : f32 to vector<1x2048xf32>
    %174 = arith.mulf %173, %171 : vector<1x2048xf32>
    %c1_82 = arith.constant 1 : index
    %c8_83 = arith.constant 8 : index
    %175 = memref.load %arg3[%c1_82, %c8_83] : memref<2x10xf32, #tpu.memory_space<smem>>
    %176 = vector.broadcast %175 : f32 to vector<1x2048xf32>
    %177 = arith.mulf %176, %171 : vector<1x2048xf32>
    %178 = arith.addf %158, %174 : vector<1x2048xf32>
    %179 = arith.addf %159, %177 : vector<1x2048xf32>
    %c9 = arith.constant 9 : index
    %c0_84 = arith.constant 0 : index
    %180 = memref.load %arg1[%c9, %c0_84] : memref<10x2xf32, #tpu.memory_space<smem>>
    %181 = vector.broadcast %180 : f32 to vector<1x2048xf32>
    %182 = arith.mulf %181, %0 : vector<1x2048xf32>
    %c9_85 = arith.constant 9 : index
    %c1_86 = arith.constant 1 : index
    %183 = memref.load %arg1[%c9_85, %c1_86] : memref<10x2xf32, #tpu.memory_space<smem>>
    %184 = vector.broadcast %183 : f32 to vector<1x2048xf32>
    %185 = arith.mulf %184, %1 : vector<1x2048xf32>
    %186 = arith.addf %182, %185 : vector<1x2048xf32>
    %c9_87 = arith.constant 9 : index
    %187 = memref.load %arg2[%c9_87] : memref<10xf32, #tpu.memory_space<smem>>
    %188 = vector.broadcast %187 : f32 to vector<1x2048xf32>
    %189 = arith.addf %186, %188 : vector<1x2048xf32>
    %cst_88 = arith.constant 0.000000e+00 : f32
    %190 = vector.broadcast %cst_88 : f32 to vector<1x2048xf32>
    %191 = arith.maximumf %189, %190 : vector<1x2048xf32>
    %c0_89 = arith.constant 0 : index
    %c9_90 = arith.constant 9 : index
    %192 = memref.load %arg3[%c0_89, %c9_90] : memref<2x10xf32, #tpu.memory_space<smem>>
    %193 = vector.broadcast %192 : f32 to vector<1x2048xf32>
    %194 = arith.mulf %193, %191 : vector<1x2048xf32>
    %c1_91 = arith.constant 1 : index
    %c9_92 = arith.constant 9 : index
    %195 = memref.load %arg3[%c1_91, %c9_92] : memref<2x10xf32, #tpu.memory_space<smem>>
    %196 = vector.broadcast %195 : f32 to vector<1x2048xf32>
    %197 = arith.mulf %196, %191 : vector<1x2048xf32>
    %198 = arith.addf %178, %194 : vector<1x2048xf32>
    %199 = arith.addf %179, %197 : vector<1x2048xf32>
    %c0_93 = arith.constant 0 : index
    %200 = memref.load %arg4[%c0_93] : memref<2xf32, #tpu.memory_space<smem>>
    %201 = vector.broadcast %200 : f32 to vector<1x2048xf32>
    %202 = arith.addf %198, %201 : vector<1x2048xf32>
    %c1_94 = arith.constant 1 : index
    %203 = memref.load %arg4[%c1_94] : memref<2xf32, #tpu.memory_space<smem>>
    %204 = vector.broadcast %203 : f32 to vector<1x2048xf32>
    %205 = arith.addf %199, %204 : vector<1x2048xf32>
    %206 = arith.maximumf %202, %205 : vector<1x2048xf32>
    %207 = arith.subf %202, %206 : vector<1x2048xf32>
    %208 = math.exp %207 : vector<1x2048xf32>
    %209 = arith.subf %205, %206 : vector<1x2048xf32>
    %210 = math.exp %209 : vector<1x2048xf32>
    %211 = arith.addf %208, %210 : vector<1x2048xf32>
    %212 = tpu.reciprocal %211 {approx = true} : vector<1x2048xf32> -> vector<1x2048xf32>
    %213 = arith.mulf %208, %212 : vector<1x2048xf32>
    %c0_95 = arith.constant 0 : index
    %c0_96 = arith.constant 0 : index
    %214 = vector.load %arg6[%c0_95, %c0_96] : memref<2x2048xf32, #tpu.memory_space<vmem>>, vector<1x2048xf32>
    tpu.vector_store %arg6[%c0_95, %c0_96], %213 {strides = array<i32>} : memref<2x2048xf32, #tpu.memory_space<vmem>>, vector<1x2048xf32>,
    %215 = arith.mulf %210, %212 : vector<1x2048xf32>
    %c1_97 = arith.constant 1 : index
    %c0_98 = arith.constant 0 : index
    %216 = vector.load %arg6[%c1_97, %c0_98] : memref<2x2048xf32, #tpu.memory_space<vmem>>, vector<1x2048xf32>
    tpu.vector_store %arg6[%c1_97, %c0_98], %215 {strides = array<i32>} : memref<2x2048xf32, #tpu.memory_space<vmem>>, vector<1x2048xf32>,
    return
  }
  func.func @transform_0(%arg0: i32) -> (i32, i32) {
    %c0_i32 = arith.constant 0 : i32
    %c0_i32_0 = arith.constant 0 : i32
    %c0_i32_1 = arith.constant 0 : i32
    return %c0_i32, %c0_i32_0 : i32, i32
  }
  func.func @transform_1(%arg0: i32) -> i32 {
    %c0_i32 = arith.constant 0 : i32
    %c0_i32_0 = arith.constant 0 : i32
    return %c0_i32 : i32
  }
  func.func @transform_2(%arg0: i32) -> (i32, i32) {
    %c0_i32 = arith.constant 0 : i32
    %c0_i32_0 = arith.constant 0 : i32
    %c0_i32_1 = arith.constant 0 : i32
    return %c0_i32, %c0_i32_0 : i32, i32
  }
  func.func @transform_3(%arg0: i32) -> i32 {
    %c0_i32 = arith.constant 0 : i32
    %c0_i32_0 = arith.constant 0 : i32
    return %c0_i32 : i32
  }
  func.func @transform_4(%arg0: i32) -> (i32, i32) {
    %c0_i32 = arith.constant 0 : i32
    %c0_i32_0 = arith.constant 0 : i32
    return %c0_i32, %arg0 : i32, i32
  }
  func.func @transform_5(%arg0: i32) -> (i32, i32) {
    %c0_i32 = arith.constant 0 : i32
    %c0_i32_0 = arith.constant 0 : i32
    return %c0_i32, %arg0 : i32, i32
  }
}

</mosaic_0001>

<bundles_post_ra>
// kernel: net_forward.1
= control target key start
LH: loop header
LB: loop body
LE: loop exit
PB: predicated region body
PF: predicated region fallthrough
CT: control target
= control target key end

     0   :  { %10 = vsyncpa [#allocation3], 0  ;;  %s790_s0 = inlined_call_operand.vmem [shape: f32[10,2], index: 0, kind: input, shape index: {}]   ;;  %s791_s1 = inlined_call_operand.vmem [shape: f32[10], index: 1, kind: input, shape index: {}]   ;;  %s792_s2 = inlined_call_operand.vmem [shape: f32[2,10], index: 2, kind: input, shape index: {}]   ;;  %s793_s3 = inlined_call_operand.vmem [shape: f32[2], index: 3, kind: input, shape index: {}]   ;;  %s794_s4 = inlined_call_operand.vmem [shape: f32[2,2048], index: 4, kind: input, shape index: {}]   ;;  %s795_s5 = inlined_call_operand.vmem [shape: f32[2,2048], index: 5, kind: output, shape index: {}]  }
   0x1   :  { %11 = vsyncpa [#allocation5], 0  ;;  %s31_s20 = sshll.u32 %s791_s1, 4  ;;  %s32_s20 = int_to_ptr.vmem [resolvable:$true] %s31_s20 }
   0x2   :  { %12 = vsyncpa [#allocation8], 0  ;;  %s18_s23 = sshll.u32 %s790_s0, 4  ;;  %s469_s24 = scalar_lea.vmem %s32_s20, 16  ;;  %s19_s23 = int_to_ptr.vmem [resolvable:$true] %s18_s23 }
   0x3   :  { %p470_p0 = scmp.ne.s32.totalorder %s32_s20, %s469_s24  ;;  %p474_p1 = scmp.lt.s32.totalorder %s32_s20, %s32_s20 }
   0x4   :  { %p475_p2 = scmp.lt.s32.totalorder %s469_s24, %s469_s24 }
   0x6   :  { %p476_p3 = por %p475_p2, %p474_p1 }
   0x8   :  { %p477_p4 = pnand %p476_p3, %p470_p0 }
   0xa   :  { %480 = shalt.err (!%p477_p4)
}
   0xb   :  { %s523_s25 = smov [#allocation4]   ;;  %s481_s26 = scalar_lea.vmem %s19_s23, 256 }
   0xc   :  { %34 = dma.vmem_to_smem %s32_s20, 16, %s523_s25, [#allocation5]  }
   0xd   :  { %p482_p5 = scmp.ne.s32.totalorder %s19_s23, %s481_s26  ;;  %p486_p6 = scmp.lt.s32.totalorder %s19_s23, %s19_s23 }
   0xe   :  { %p487_p7 = scmp.lt.s32.totalorder %s481_s26, %s481_s26 }
  0x10   :  { %p488_p8 = por %p487_p7, %p486_p6 }
  0x12   :  { %p489_p9 = pnand %p488_p8, %p482_p5 }
  0x14   :  { %492 = shalt.err (!%p489_p9)
}
  0x15   :  { %s524_s1 = smov [#allocation2]   ;;  %s525_s27 = smov 128  }
  0x16   :  { %s526_s0 = smov 8   ;;  %s41_s30 = sshll.u32 %s792_s2, 4  ;;  %s42_s30 = int_to_ptr.vmem [resolvable:$true] %s41_s30 }
  0x17   :  { %24 = dma.vmem_to_smem %s19_s23, 256, %s524_s1, [#allocation3], %s525_s27, %s525_s27, %s526_s0  }
  0x18   :  { %s51_s8 = sshll.u32 %s793_s3, 4  ;;  %s493_s9 = scalar_lea.vmem %s42_s30, 32  ;;  %s52_s8 = int_to_ptr.vmem [resolvable:$true] %s51_s8 }
  0x19   :  { %p494_p10 = scmp.ne.s32.totalorder %s42_s30, %s493_s9  ;;  %p498_p11 = scmp.lt.s32.totalorder %s42_s30, %s42_s30 }
  0x1a   :  { %p499_p12 = scmp.lt.s32.totalorder %s493_s9, %s493_s9 }
  0x1c   :  { %p500_p13 = por %p499_p12, %p498_p11 }
  0x1e   :  { %p501_p0 = pnand %p500_p13, %p494_p10 }
  0x20   :  { %504 = shalt.err (!%p501_p0)
}
  0x21   :  { %s527_s10 = smov [#allocation6]   ;;  %s505_s11 = scalar_lea.vmem %s52_s8, 16 }
  0x22   :  { %44 = dma.vmem_to_smem %s42_s30, 32, %s527_s10, [#allocation5]  }
  0x23   :  { %p506_p1 = scmp.ne.s32.totalorder %s52_s8, %s505_s11  ;;  %p510_p2 = scmp.lt.s32.totalorder %s52_s8, %s52_s8 }
  0x24   :  { %p511_p3 = scmp.lt.s32.totalorder %s505_s11, %s505_s11 }
  0x26   :  { %p512_p4 = por %p511_p3, %p510_p2 }
  0x28   :  { %p513_p5 = pnand %p512_p4, %p506_p1 }
  0x2a   :  { %516 = shalt.err (!%p513_p5)
}
  0x2b   :  { %s528_s2 = smov [#allocation7]  }
  0x2c   :  { %54 = dma.vmem_to_smem %s52_s8, 16, %s528_s2, [#allocation8]  }
  0x2d   :  { %517 = dma.done.wait [#allocation3], 256  }
  0x2e   :  { %518 = vsyncadd [#allocation3], 4294967040 }
  0x2f   :  { %519 = dma.done.wait [#allocation5], 48  }
  0x30   :  { %520 = vsyncadd [#allocation5], 4294967248 }
  0x31   :  { %521 = dma.done.wait [#allocation8], 16  }
  0x32   :  { %522 = vsyncadd [#allocation8], 4294967280 }
  0x33   :  { %69 = sfence }
  0x34   :  { %s77_s3 = sld [smem:[#allocation2]]  ;;  %s400_s12 = sld [smem:[#allocation2 + $0x1]]  ;;  %v578_v0 = vld [vmem:[%s794_s4] ss:$2 sm:$0xff]  ;;  %v583_v1 = vld [vmem:[%s794_s4 + $0x10] ss:$2 sm:$0xff] }
  0x35   :  { %s571_s13 = sld [smem:[#allocation4]]  ;;  %v590_v2 = vld [vmem:[%s794_s4 + $0x1] ss:$2 sm:$0xff]  ;;  %s592_s23 = sld [smem:[#allocation2 + $0x81]]  ;;  %v599_v3 = vld [vmem:[%s794_s4 + $0x11] ss:$2 sm:$0xff] }
  0x36   :  { %s573_s14 = sld [smem:[#allocation6]]  ;;  %s594_s24 = sld [smem:[#allocation4 + $0x1]] }
  0x37   :  { %s585_s19 = sld [smem:[#allocation6 + $0x80]]  ;;  %s601_s1 = sld [smem:[#allocation6 + $0x1]] }
  0x38   :  { %s402_s20 = sld [smem:[#allocation2 + $0x80]]  ;;  %s603_s27 = sld [smem:[#allocation6 + $0x81]] }
  0x39   :  { %s605_s0 = sld [smem:[#allocation2 + $0x100]]  ;;  %s607_s28 = sld [smem:[#allocation2 + $0x101]] }
  0x3a   :  { %v78_v4 = vstv %s77_s3  ;;  %v82_v5 = vstv %s400_s12  ;;  %s609_s29 = sld [smem:[#allocation4 + $0x2]]  ;;  %s622_s6 = sld [smem:[#allocation2 + $0x180]] }
  0x3b   :  { %s611_s30 = sld [smem:[#allocation6 + $0x2]]  ;;  %v79_v6 = vmul.f32 %v78_v4, %v578_v0  ;;  %v80_v7 = vmul.f32 %v583_v1, %v78_v4  ;;  %v83_v8 = vmul.f32 %v590_v2, %v82_v5  ;;  %v84_v9 = vmul.f32 %v599_v3, %v82_v5  ;;  %s626_s7 = sld [smem:[#allocation2 + $0x181]] }
  0x3c   :  { %v88_v10 = vstv %s571_s13  ;;  %v94_v11 = vstv %s573_s14  ;;  %s620_s4 = sld [smem:[#allocation6 + $0x82]]  ;;  %s628_s8 = sld [smem:[#allocation4 + $0x3]]  ;;  %v106_v18 = vstv %s592_s23  ;;  %v112_v19 = vstv %s594_s24 }
  0x3d   :  { %v98_v12 = vstv %s585_s19  ;;  %v85_v14 = vadd.f32 %v83_v8, %v79_v6  ;;  %v86_v15 = vadd.f32 %v84_v9, %v80_v7  ;;  %v118_v20 = vstv %s601_s1  ;;  %s648_s9 = sld [smem:[#allocation6 + $0x3]]  ;;  %s652_s11 = sld [smem:[#allocation2 + $0x200]] }
  0x3e   :  { %v102_v13 = vstv %s402_s20  ;;  %v122_v21 = vstv %s603_s27  ;;  %v107_v24 = vmul.f32 %v590_v2, %v106_v18  ;;  %v108_v25 = vmul.f32 %v599_v3, %v106_v18  ;;  %s650_s10 = sld [smem:[#allocation6 + $0x83]]  ;;  %s654_s2 = sld [smem:[#allocation2 + $0x201]] }
  0x3f   :  { %v103_v16 = vmul.f32 %v102_v13, %v578_v0  ;;  %v104_v17 = vmul.f32 %v583_v1, %v102_v13  ;;  %v89_v22 = vadd.f32 %v88_v10, %v85_v14  ;;  %v90_v23 = vadd.f32 %v88_v10, %v86_v15  ;;  %s660_s3 = sld [smem:[#allocation4 + $0x4]]  ;;  %s664_s13 = sld [smem:[#allocation2 + $0x280]] }
  0x40   :  { %v130_v26 = vstv %s605_s0  ;;  %v134_v27 = vstv %s607_s28  ;;  %v140_v28 = vstv %s609_s29  ;;  %v158_v47 = vstv %s622_s6  ;;  %s662_s12 = sld [smem:[#allocation6 + $0x4]]  ;;  %s668_s15 = sld [smem:[#allocation2 + $0x281]] }
  0x41   :  { %v146_v29 = vstv %s611_s30  ;;  %v91_v30 = vmax.f32 %v89_v22, 0.0  ;;  %v92_v31 = vmax.f32 %v90_v23, 0.0  ;;  %v109_v32 = vadd.f32 %v107_v24, %v103_v16  ;;  %s666_s14 = sld [smem:[#allocation6 + $0x84]]  ;;  %s674_s16 = sld [smem:[#allocation4 + $0x5]] }
  0x42   :  { %v110_v33 = vadd.f32 %v108_v25, %v104_v17  ;;  %v131_v34 = vmul.f32 %v130_v26, %v578_v0  ;;  %v132_v35 = vmul.f32 %v583_v1, %v130_v26  ;;  %v135_v36 = vmul.f32 %v590_v2, %v134_v27  ;;  %s676_s17 = sld [smem:[#allocation2 + $0x300]]  ;;  %s682_s18 = sld [smem:[#allocation2 + $0x301]] }
  0x43   :  { %v136_v37 = vmul.f32 %v599_v3, %v134_v27  ;;  %v95_v38 = vmul.f32 %v94_v11, %v91_v30  ;;  %v96_v39 = vmul.f32 %v94_v11, %v92_v31  ;;  %v99_v40 = vmul.f32 %v98_v12, %v91_v30  ;;  %s685_s19 = sld [smem:[#allocation6 + $0x5]]  ;;  %s691_s21 = sld [smem:[#allocation4 + $0x6]] }
  0x44   :  { %v100_v41 = vmul.f32 %v98_v12, %v92_v31  ;;  %v113_v42 = vadd.f32 %v112_v19, %v109_v32  ;;  %v114_v43 = vadd.f32 %v112_v19, %v110_v33  ;;  %v137_v44 = vadd.f32 %v135_v36, %v131_v34  ;;  %s687_s20 = sld [smem:[#allocation6 + $0x85]]  ;;  %s693_s22 = sld [smem:[#allocation2 + $0x380]] }
  0x45   :  { %v138_v45 = vadd.f32 %v136_v37, %v132_v35  ;;  %v150_v46 = vstv %s620_s4  ;;  %v162_v48 = vstv %s626_s7  ;;  %v168_v49 = vstv %s628_s8  ;;  %s701_s23 = sld [smem:[#allocation2 + $0x381]]  ;;  %s706_s24 = sld [smem:[#allocation6 + $0x6]] }
  0x46   :  { %v115_v50 = vmax.f32 %v113_v42, 0.0  ;;  %v116_v51 = vmax.f32 %v114_v43, 0.0  ;;  %v141_v52 = vadd.f32 %v140_v28, %v137_v44  ;;  %v159_v54 = vmul.f32 %v158_v47, %v578_v0  ;;  %s710_s25 = sld [smem:[#allocation6 + $0x86]]  ;;  %s712_s26 = sld [smem:[#allocation4 + $0x7]] }
  0x47   :  { %v142_v53 = vadd.f32 %v140_v28, %v138_v45  ;;  %v160_v55 = vmul.f32 %v583_v1, %v158_v47  ;;  %v163_v56 = vmul.f32 %v590_v2, %v162_v48  ;;  %v164_v57 = vmul.f32 %v599_v3, %v162_v48  ;;  %s718_s1 = sld [smem:[#allocation2 + $0x400]]  ;;  %s722_s27 = sld [smem:[#allocation2 + $0x401]] }
  0x48   :  { %v119_v58 = vmul.f32 %v118_v20, %v115_v50  ;;  %v120_v59 = vmul.f32 %v118_v20, %v116_v51  ;;  %v123_v60 = vmul.f32 %v122_v21, %v115_v50  ;;  %v124_v61 = vmul.f32 %v122_v21, %v116_v51  ;;  %s727_s0 = sld [smem:[#allocation6 + $0x7]]  ;;  %s733_s29 = sld [smem:[#allocation2 + $0x480]] }
  0x49   :  { %v143_v62 = vmax.f32 %v141_v52, 0.0  ;;  %v144_v63 = vmax.f32 %v142_v53, 0.0  ;;  %v165_v4 = vadd.f32 %v163_v56, %v159_v54  ;;  %v166_v5 = vadd.f32 %v164_v57, %v160_v55  ;;  %s731_s28 = sld [smem:[#allocation6 + $0x87]]  ;;  %s738_s30 = sld [smem:[#allocation4 + $0x8]] }
  0x4a   :  { %v125_v6 = vadd.f32 %v119_v58, %v95_v38  ;;  %v126_v7 = vadd.f32 %v120_v59, %v96_v39  ;;  %v127_v8 = vadd.f32 %v123_v60, %v99_v40  ;;  %v128_v9 = vadd.f32 %v124_v61, %v100_v41  ;;  %s742_s4 = sld [smem:[#allocation6 + $0x8]]  ;;  %s744_s6 = sld [smem:[#allocation2 + $0x481]] }
  0x4b   :  { %v147_v10 = vmul.f32 %v146_v29, %v143_v62  ;;  %v148_v11 = vmul.f32 %v146_v29, %v144_v63  ;;  %v151_v12 = vmul.f32 %v150_v46, %v143_v62  ;;  %v152_v13 = vmul.f32 %v150_v46, %v144_v63  ;;  %s746_s7 = sld [smem:[#allocation6 + $0x88]]  ;;  %s751_s8 = sld [smem:[#allocation4 + $0x9]] }
  0x4c   :  { %v169_v14 = vadd.f32 %v168_v49, %v165_v4  ;;  %v170_v15 = vadd.f32 %v168_v49, %v166_v5  ;;  %v174_v18 = vstv %s648_s9  ;;  %v178_v19 = vstv %s650_s10  ;;  %s758_s9 = sld [smem:[#allocation6 + $0x9]] }
  0x4d   :  { %v153_v16 = vadd.f32 %v147_v10, %v125_v6  ;;  %v154_v17 = vadd.f32 %v148_v11, %v126_v7  ;;  %v186_v22 = vstv %s652_s11  ;;  %v190_v23 = vstv %s654_s2  ;;  %s760_s10 = sld [smem:[#allocation6 + $0x89]]  ;;  %s770_s11 = sld [smem:[#allocation7]] }
  0x4e   :  { %v171_v20 = vmax.f32 %v169_v14, 0.0  ;;  %v172_v21 = vmax.f32 %v170_v15, 0.0  ;;  %v187_v24 = vmul.f32 %v186_v22, %v578_v0  ;;  %v188_v25 = vmul.f32 %v583_v1, %v186_v22  ;;  %s772_s2 = sld [smem:[#allocation7 + $0x1]] }
  0x4f   :  { %v191_v26 = vmul.f32 %v590_v2, %v190_v23  ;;  %v192_v27 = vmul.f32 %v599_v3, %v190_v23  ;;  %v155_v28 = vadd.f32 %v151_v12, %v127_v8  ;;  %v156_v31 = vadd.f32 %v152_v13, %v128_v9 }
  0x50   :  { %v175_v29 = vmul.f32 %v174_v18, %v171_v20  ;;  %v176_v30 = vmul.f32 %v174_v18, %v172_v21  ;;  %v196_v34 = vstv %s660_s3  ;;  %v179_v35 = vmul.f32 %v178_v19, %v171_v20 }
  0x51   :  { %v193_v32 = vadd.f32 %v191_v26, %v187_v24  ;;  %v194_v33 = vadd.f32 %v192_v27, %v188_v25  ;;  %v180_v36 = vmul.f32 %v178_v19, %v172_v21  ;;  %v202_v38 = vstv %s662_s12 }
  0x52   :  { %v181_v37 = vadd.f32 %v175_v29, %v153_v16  ;;  %v182_v39 = vadd.f32 %v176_v30, %v154_v17  ;;  %v214_v42 = vstv %s664_s13  ;;  %v206_v43 = vstv %s666_s14 }
  0x53   :  { %v197_v40 = vadd.f32 %v196_v34, %v193_v32  ;;  %v198_v41 = vadd.f32 %v196_v34, %v194_v33  ;;  %v215_v44 = vmul.f32 %v214_v42, %v578_v0  ;;  %v216_v45 = vmul.f32 %v583_v1, %v214_v42 }
  0x54   :  { %v218_v46 = vstv %s668_s15  ;;  %v183_v51 = vadd.f32 %v179_v35, %v155_v28  ;;  %v184_v52 = vadd.f32 %v180_v36, %v156_v31  ;;  %v224_v53 = vstv %s674_s16 }
  0x55   :  { %v199_v47 = vmax.f32 %v197_v40, 0.0  ;;  %v200_v48 = vmax.f32 %v198_v41, 0.0  ;;  %v219_v49 = vmul.f32 %v590_v2, %v218_v46  ;;  %v220_v50 = vmul.f32 %v599_v3, %v218_v46 }
  0x56   :  { %v242_v54 = vstv %s676_s17  ;;  %v246_v58 = vstv %s682_s18  ;;  %v230_v5 = vstv %s685_s19  ;;  %v234_v6 = vstv %s687_s20 }
  0x57   :  { %v203_v55 = vmul.f32 %v202_v38, %v199_v47  ;;  %v204_v56 = vmul.f32 %v202_v38, %v200_v48  ;;  %v207_v57 = vmul.f32 %v206_v43, %v199_v47  ;;  %v221_v59 = vadd.f32 %v219_v49, %v215_v44 }
  0x58   :  { %v222_v60 = vadd.f32 %v220_v50, %v216_v45  ;;  %v243_v61 = vmul.f32 %v242_v54, %v578_v0  ;;  %v244_v62 = vmul.f32 %v583_v1, %v242_v54  ;;  %v208_v63 = vmul.f32 %v206_v43, %v200_v48 }
  0x59   :  { %v209_v4 = vadd.f32 %v203_v55, %v181_v37  ;;  %v225_v7 = vadd.f32 %v224_v53, %v221_v59  ;;  %v247_v9 = vmul.f32 %v590_v2, %v246_v58  ;;  %v248_v10 = vmul.f32 %v599_v3, %v246_v58 }
  0x5a   :  { %v226_v8 = vadd.f32 %v224_v53, %v222_v60  ;;  %v210_v11 = vadd.f32 %v204_v56, %v182_v39  ;;  %v211_v12 = vadd.f32 %v207_v57, %v183_v51  ;;  %v252_v13 = vstv %s691_s21 }
  0x5b   :  { %v270_v14 = vstv %s693_s22  ;;  %v227_v15 = vmax.f32 %v225_v7, 0.0  ;;  %v249_v17 = vadd.f32 %v247_v9, %v243_v61  ;;  %v250_v18 = vadd.f32 %v248_v10, %v244_v62 }
  0x5c   :  { %v228_v16 = vmax.f32 %v226_v8, 0.0  ;;  %v212_v19 = vadd.f32 %v208_v63, %v184_v52  ;;  %v271_v20 = vmul.f32 %v270_v14, %v578_v0  ;;  %v272_v21 = vmul.f32 %v583_v1, %v270_v14 }
  0x5d   :  { %v274_v22 = vstv %s701_s23  ;;  %v231_v23 = vmul.f32 %v230_v5, %v227_v15  ;;  %v235_v25 = vmul.f32 %v234_v6, %v227_v15  ;;  %v253_v27 = vadd.f32 %v252_v13, %v249_v17 }
  0x5e   :  { %v232_v24 = vmul.f32 %v230_v5, %v228_v16  ;;  %v236_v26 = vmul.f32 %v234_v6, %v228_v16  ;;  %v254_v28 = vadd.f32 %v252_v13, %v250_v18  ;;  %v275_v29 = vmul.f32 %v590_v2, %v274_v22 }
  0x5f   :  { %v276_v30 = vmul.f32 %v599_v3, %v274_v22  ;;  %v258_v31 = vstv %s706_s24  ;;  %v262_v32 = vstv %s710_s25  ;;  %v280_v33 = vstv %s712_s26 }
  0x60   :  { %v255_v34 = vmax.f32 %v253_v27, 0.0  ;;  %v256_v35 = vmax.f32 %v254_v28, 0.0  ;;  %v277_v36 = vadd.f32 %v275_v29, %v271_v20  ;;  %v237_v38 = vadd.f32 %v231_v23, %v209_v4 }
  0x61   :  { %v278_v37 = vadd.f32 %v276_v30, %v272_v21  ;;  %v238_v39 = vadd.f32 %v232_v24, %v210_v11  ;;  %v298_v40 = vstv %s718_s1  ;;  %v239_v41 = vadd.f32 %v235_v25, %v211_v12 }
  0x62   :  { %v240_v42 = vadd.f32 %v236_v26, %v212_v19  ;;  %v259_v43 = vmul.f32 %v258_v31, %v255_v34  ;;  %v302_v44 = vstv %s722_s27  ;;  %v260_v45 = vmul.f32 %v258_v31, %v256_v35 }
  0x63   :  { %v263_v46 = vmul.f32 %v262_v32, %v255_v34  ;;  %v281_v47 = vadd.f32 %v280_v33, %v277_v36  ;;  %v282_v48 = vadd.f32 %v280_v33, %v278_v37  ;;  %v264_v49 = vmul.f32 %v262_v32, %v256_v35 }
  0x64   :  { %v286_v50 = vstv %s727_s0  ;;  %v299_v51 = vmul.f32 %v298_v40, %v578_v0  ;;  %v300_v52 = vmul.f32 %v583_v1, %v298_v40  ;;  %v303_v55 = vmul.f32 %v590_v2, %v302_v44 }
  0x65   :  { %v283_v53 = vmax.f32 %v281_v47, 0.0  ;;  %v284_v54 = vmax.f32 %v282_v48, 0.0  ;;  %v304_v56 = vmul.f32 %v599_v3, %v302_v44  ;;  %v265_v57 = vadd.f32 %v259_v43, %v237_v38 }
  0x66   :  { %v290_v58 = vstv %s731_s28  ;;  %v326_v59 = vstv %s733_s29  ;;  %v266_v60 = vadd.f32 %v260_v45, %v238_v39  ;;  %v267_v61 = vadd.f32 %v263_v46, %v239_v41 }
  0x67   :  { %v287_v62 = vmul.f32 %v286_v50, %v283_v53  ;;  %v308_v63 = vstv %s738_s30  ;;  %v268_v4 = vadd.f32 %v264_v49, %v240_v42  ;;  %v288_v5 = vmul.f32 %v286_v50, %v284_v54 }
  0x68   :  { %v305_v6 = vadd.f32 %v303_v55, %v299_v51  ;;  %v306_v7 = vadd.f32 %v304_v56, %v300_v52  ;;  %v291_v8 = vmul.f32 %v290_v58, %v283_v53  ;;  %v292_v9 = vmul.f32 %v290_v58, %v284_v54 }
  0x69   :  { %v327_v10 = vmul.f32 %v326_v59, %v578_v0  ;;  %v328_v11 = vmul.f32 %v583_v1, %v326_v59  ;;  %v314_v14 = vstv %s742_s4  ;;  %v330_v15 = vstv %s744_s6 }
  0x6a   :  { %v309_v12 = vadd.f32 %v308_v63, %v305_v6  ;;  %v310_v13 = vadd.f32 %v308_v63, %v306_v7  ;;  %v293_v16 = vadd.f32 %v287_v62, %v265_v57  ;;  %v318_v17 = vstv %s746_s7 }
  0x6b   :  { %v331_v18 = vmul.f32 %v590_v2, %v330_v15  ;;  %v332_v19 = vmul.f32 %v599_v3, %v330_v15  ;;  %v294_v20 = vadd.f32 %v288_v5, %v266_v60  ;;  %v336_v23 = vstv %s751_s8 }
  0x6c   :  { %v311_v21 = vmax.f32 %v309_v12, 0.0  ;;  %v312_v22 = vmax.f32 %v310_v13, 0.0  ;;  %v295_v0 = vadd.f32 %v291_v8, %v267_v61  ;;  %v296_v1 = vadd.f32 %v292_v9, %v268_v4 }
  0x6d   :  { %v333_v24 = vadd.f32 %v331_v18, %v327_v10  ;;  %v334_v25 = vadd.f32 %v332_v19, %v328_v11  ;;  %v342_v32 = vstv %s758_s9  ;;  %v346_v33 = vstv %s760_s10 }
  0x6e   :  { %v315_v26 = vmul.f32 %v314_v14, %v311_v21  ;;  %v316_v27 = vmul.f32 %v314_v14, %v312_v22  ;;  %v319_v28 = vmul.f32 %v318_v17, %v311_v21  ;;  %v320_v2 = vmul.f32 %v318_v17, %v312_v22 }
  0x6f   :  { %v337_v3 = vadd.f32 %v336_v23, %v333_v24  ;;  %v338_v29 = vadd.f32 %v336_v23, %v334_v25  ;;  %v354_v42 = vstv %s770_s11  ;;  %v358_v43 = vstv %s772_s2 }
  0x70   :  { %v321_v30 = vadd.f32 %v315_v26, %v293_v16  ;;  %v322_v31 = vadd.f32 %v316_v27, %v294_v20  ;;  %v323_v34 = vadd.f32 %v319_v28, %v295_v0  ;;  %v324_v35 = vadd.f32 %v320_v2, %v296_v1 }
  0x71   :  { %v339_v36 = vmax.f32 %v337_v3, 0.0  ;;  %v340_v37 = vmax.f32 %v338_v29, 0.0 }
  0x73   :  { %v343_v38 = vmul.f32 %v342_v32, %v339_v36  ;;  %v344_v39 = vmul.f32 %v342_v32, %v340_v37  ;;  %v347_v40 = vmul.f32 %v346_v33, %v339_v36  ;;  %v348_v41 = vmul.f32 %v346_v33, %v340_v37 }
  0x75   :  { %v349_v44 = vadd.f32 %v343_v38, %v321_v30  ;;  %v350_v45 = vadd.f32 %v344_v39, %v322_v31  ;;  %v351_v46 = vadd.f32 %v347_v40, %v323_v34  ;;  %v352_v47 = vadd.f32 %v348_v41, %v324_v35 }
  0x77   :  { %v355_v48 = vadd.f32 %v354_v42, %v349_v44  ;;  %v356_v49 = vadd.f32 %v354_v42, %v350_v45  ;;  %v359_v50 = vadd.f32 %v358_v43, %v351_v46  ;;  %v360_v51 = vadd.f32 %v358_v43, %v352_v47 }
  0x79   :  { %v361_v52 = vmax.f32 %v355_v48, %v359_v50  ;;  %v362_v53 = vmax.f32 %v356_v49, %v360_v51 }
  0x7b   :  { %v363_v54 = vsub.f32 %v355_v48, %v361_v52  ;;  %v364_v55 = vsub.f32 %v356_v49, %v362_v53  ;;  %v369_v56 = vsub.f32 %v359_v50, %v361_v52  ;;  %v370_v57 = vsub.f32 %v360_v51, %v362_v53 }
  0x7d   :  { %v365_v58 = vmul.f32 1.442695, %v363_v54  ;;  %v367_v59 = vmul.f32 1.442695, %v364_v55  ;;  %v371_v60 = vmul.f32 1.442695, %v369_v56 }
  0x7e   :  { %v373_v61 = vmul.f32 1.442695, %v370_v57 }
  0x7f   :  { %457 = vpow2.f32 %v365_v58 }
  0x80   :  { %459 = vpow2.f32 %v367_v59 }
  0x81   :  { %461 = vpow2.f32 %v371_v60 }
  0x82   :  { %463 = vpow2.f32 %v373_v61 }
  0x89   :  { %v458_v62 = vpop.eup %457 }
  0x8a   :  { %v460_v63 = vpop.eup %459 }
  0x8b   :  { %v462_v4 = vpop.eup %461 }
  0x8c   :  { %v464_v5 = vpop.eup %463  ;;  %v375_v6 = vadd.f32 %v462_v4, %v458_v62 }
  0x8d   :  { %v376_v7 = vadd.f32 %v464_v5, %v460_v63 }
  0x8e   :  { %465 = vrcp.f32 %v375_v6 }
  0x8f   :  { %467 = vrcp.f32 %v376_v7 }
  0x98   :  { %v466_v8 = vpop.eup %465 }
  0x99   :  { %v468_v9 = vpop.eup %467  ;;  %v379_v10 = vmul.f32 %v466_v8, %v458_v62  ;;  %v384_v11 = vmul.f32 %v466_v8, %v462_v4 }
  0x9a   :  { %v380_v12 = vmul.f32 %v468_v9, %v460_v63  ;;  %v385_v13 = vmul.f32 %v468_v9, %v464_v5 }
  0x9b   :  { %381 = vst [vmem:[%s795_s5] ss:$2 sm:$0xff] %v379_v10  ;;  %449 = vst [vmem:[%s795_s5 + $0x1] ss:$2 sm:$0xff] %v384_v11 }
  0x9c   :  { %448 = vst [vmem:[%s795_s5 + $0x10] ss:$2 sm:$0xff] %v380_v12  ;;  %450 = vst [vmem:[%s795_s5 + $0x11] ss:$2 sm:$0xff] %v385_v13 }
  0x9d   :  { %394 = vsyncpa [#allocation3], 1 }
  0x9e   :  { %395 = vsyncpa [#allocation5], 1 }
  0x9f   :  { %396 = vsyncpa [#allocation8], 1 }

</bundles_post_ra>
